<compile_context>
chip_gen: v6e
topology: v6e:2x2x1
jax: 0.10.0
libtpu: 0.0.40
codegen_flags: <defaults>
</compile_context>

<pallas_src>
import functools
import math

import jax
import jax.numpy as jnp
from jax.experimental import pallas as pl
from jax.experimental.pallas import tpu as pltpu


def _pick_d_chunk(d: int) -> int:
    """Lane-aligned chunk of the hidden dim for the in-kernel reduction loop."""
    for dc in (1024, 512, 256, 128):
        if d % dc == 0:
            return dc
    return d  # small / odd D: single shot


def _groupwise_linear_kernel(x_ref, w_ref, b_ref, o_ref, *, d_chunk):
    # x_ref: (TB, K, D)   w_ref: (1, K, D)   b_ref: (1, K)   o_ref: (TB, K)
    tb, k, d = x_ref.shape
    n_chunks = d // d_chunk

    def compute_chunk(lo, acc):
        xs = x_ref[:, :, pl.ds(lo, d_chunk)]          # (TB, K, DC) in load dtype
        ws = w_ref[:, :, pl.ds(lo, d_chunk)]          # (1,  K, DC) resident block
        # Multiply in the load dtype (no wrapper pre-cast, no per-step W cast);
        # accumulate the reduction over D in f32.
        return acc + jnp.sum(xs * ws, axis=-1, dtype=jnp.float32)

    acc0 = jnp.zeros((tb, k), jnp.float32)
    if n_chunks <= 1:
        acc = compute_chunk(0, acc0)
    else:
        acc = jax.lax.fori_loop(
            0,
            n_chunks,
            lambda c, a: compute_chunk(pl.multiple_of(c * d_chunk, d_chunk), a),
            acc0,
            unroll=True,
        )

    o_ref[...] = (acc + b_ref[...].astype(jnp.float32)).astype(o_ref.dtype)


def _default_vmem_limit_bytes() -> int:
    # Generation-aware: ~75% of physical VMEM (v5e/v6e: 128 MiB -> 96 MiB,
    # v7x: 64 MiB -> 48 MiB).  Falls back to a safe 48 MiB.
    try:
        cap = getattr(pltpu.get_tpu_info(), "vmem_capacity_bytes", None)
        if cap:
            return int(0.75 * cap)
    except Exception:
        pass
    return 48 * 1024 * 1024


def groupwise_linear(x, W, b, *, batch_tile=None, vmem_limit_bytes=None):
    """GroupWiseLinear forward: out[b, k] = sum_d(W[0, k, d] * x[b, k, d]) + b[0, k]."""
    B, K, D = x.shape
    assert W.shape == (1, K, D)
    assert b.shape == (1, K)

    if vmem_limit_bytes is None:
        vmem_limit_bytes = _default_vmem_limit_bytes()

    x_item = jnp.dtype(x.dtype).itemsize
    w_item = jnp.dtype(W.dtype).itemsize
    d_chunk = _pick_d_chunk(D)

    if batch_tile is None:
        # VMEM budget:  double-buffered x tile + resident W block (+ its second
        # buffer) + double-buffered (TB, K) output + one f32 product chunk that
        # may spill to VMEM at large TB.  Use ~70% of the limit as headroom.
        resident = 2 * K * D * w_item
        per_row = (2 * K * D * x_item      # x, double-buffered
                   + 2 * K * 4             # out, double-buffered (<= f32)
                   + K * d_chunk * 4)      # f32 product chunk intermediate
        budget = int(0.70 * vmem_limit_bytes) - resident
        batch_tile = max(1, budget // max(per_row, 1))

    # Tile selection: either the whole batch (full-dim block is always legal)
    # or a sublane-aligned (multiple of 8) tile, per the (8, 128) block rule on
    # the (TB, K) output block.
    TB = min(int(batch_tile), B)
    if TB < B:
        TB = max(8, (TB // 8) * 8)
        if TB > B:
            TB = B

    kernel = functools.partial(_groupwise_linear_kernel, d_chunk=d_chunk)

    return pl.pallas_call(
        kernel,
        out_shape=jax.ShapeDtypeStruct((B, K), x.dtype),
        grid_spec=pltpu.PrefetchScalarGridSpec(
            num_scalar_prefetch=0,
            grid=(pl.cdiv(B, TB),),
            in_specs=[
                pl.BlockSpec((TB, K, D), lambda i: (i, 0, 0)),  # x: TB rows per step
                pl.BlockSpec((1, K, D), lambda i: (0, 0, 0)),   # W: resident across grid
                pl.BlockSpec((1, K), lambda i: (0, 0)),         # bias: resident across grid
            ],
            out_specs=pl.BlockSpec((TB, K), lambda i: (i, 0)),
        ),
        compiler_params=pltpu.CompilerParams(
            dimension_semantics=("parallel",),
            vmem_limit_bytes=int(vmem_limit_bytes),
        ),
    )(x, W, b)


def reference_groupwise_linear(x, W, b):
    return jnp.sum(W * x, axis=-1) + b


if __name__ == "__main__":
    # Small shapes consistent with the module's forward: x is (batch, num_class, hidden_dim)
    batch, num_class, hidden_dim = 2, 16, 32

    key = jax.random.PRNGKey(0)
    kx, kw, kb = jax.random.split(key, 3)

    # Deterministic init mirroring reset_parameters(): uniform(-stdv, stdv), stdv = 1/sqrt(D)
    stdv = 1.0 / math.sqrt(hidden_dim)
    W = jax.random.uniform(
        kw, (1, num_class, hidden_dim), jnp.float32, minval=-stdv, maxval=stdv
    )
    b = jax.random.uniform(
        kb, (1, num_class), jnp.float32, minval=-stdv, maxval=stdv
    )
    x = jax.random.normal(kx, (batch, num_class, hidden_dim), jnp.float32)

    out = jax.block_until_ready(groupwise_linear(x, W, b))

    ref = reference_groupwise_linear(x, W, b)
    assert out.shape == (batch, num_class)
    assert jnp.allclose(out, ref, atol=1e-5, rtol=1e-5), "mismatch vs reference"

    print("KERNEL_OK")
</pallas_src>

<mosaic_0001>
module attributes {stable_mosaic.version = 11 : i64} {
  func.func @_groupwise_linear_kernel(%arg0: i32, %arg1: memref<2x16x32xf32, #tpu.memory_space<vmem>>, %arg2: memref<1x16x32xf32, #tpu.memory_space<vmem>>, %arg3: memref<1x16xf32, #tpu.memory_space<vmem>>, %arg4: memref<2x16xf32, #tpu.memory_space<vmem>>) attributes {dimension_semantics = [#tpu.dimension_semantics<parallel>], iteration_bounds = array<i64: 1>, scalar_prefetch = 0 : i64, scratch_operands = 0 : i64, tpu.core_type = #tpu.core_type<tc>, window_params = [{transform_indices = @transform_0, window_bounds = array<i64: 2, 16, 32>}, {pipeline_mode = #tpu.pipeline_mode<synchronous>, transform_indices = @transform_1, window_bounds = array<i64: 1, 16, 32>}, {pipeline_mode = #tpu.pipeline_mode<synchronous>, transform_indices = @transform_2, window_bounds = array<i64: 1, 16>}, {transform_indices = @transform_3, window_bounds = array<i64: 2, 16>}]} {
    %cst = arith.constant 0.000000e+00 : f32
    %0 = vector.broadcast %cst : f32 to vector<2x16xf32>
    %c0 = arith.constant 0 : index
    %c0_0 = arith.constant 0 : index
    %c0_1 = arith.constant 0 : index
    %1 = vector.load %arg1[%c0, %c0_0, %c0_1] : memref<2x16x32xf32, #tpu.memory_space<vmem>>, vector<2x16x32xf32>
    %c0_2 = arith.constant 0 : index
    %c0_3 = arith.constant 0 : index
    %c0_4 = arith.constant 0 : index
    %2 = vector.load %arg2[%c0_2, %c0_3, %c0_4] : memref<1x16x32xf32, #tpu.memory_space<vmem>>, vector<1x16x32xf32>
    %3 = vector.broadcast %2 : vector<1x16x32xf32> to vector<2x16x32xf32>
    %4 = arith.mulf %1, %3 : vector<2x16x32xf32>
    %cst_5 = arith.constant dense<0.000000e+00> : vector<2x16xf32>
    %5 = vector.multi_reduction <add>, %4, %cst_5 [2] : vector<2x16x32xf32> to vector<2x16xf32>
    %6 = arith.addf %0, %5 : vector<2x16xf32>
    %c0_6 = arith.constant 0 : index
    %c0_7 = arith.constant 0 : index
    %7 = vector.load %arg3[%c0_6, %c0_7] : memref<1x16xf32, #tpu.memory_space<vmem>>, vector<1x16xf32>
    %8 = vector.broadcast %7 : vector<1x16xf32> to vector<2x16xf32>
    %9 = arith.addf %6, %8 : vector<2x16xf32>
    %c0_8 = arith.constant 0 : index
    %c0_9 = arith.constant 0 : index
    %10 = vector.load %arg4[%c0_8, %c0_9] : memref<2x16xf32, #tpu.memory_space<vmem>>, vector<2x16xf32>
    tpu.vector_store %arg4[%c0_8, %c0_9], %9 {strides = array<i32>} : memref<2x16xf32, #tpu.memory_space<vmem>>, vector<2x16xf32>,
    return
  }
  func.func @transform_0(%arg0: i32) -> (i32, i32, i32) {
    %c0_i32 = arith.constant 0 : i32
    %c0_i32_0 = arith.constant 0 : i32
    %c0_i32_1 = arith.constant 0 : i32
    return %arg0, %c0_i32, %c0_i32_0 : i32, i32, i32
  }
  func.func @transform_1(%arg0: i32) -> (i32, i32, i32) {
    %c0_i32 = arith.constant 0 : i32
    %c0_i32_0 = arith.constant 0 : i32
    %c0_i32_1 = arith.constant 0 : i32
    %c0_i32_2 = arith.constant 0 : i32
    return %c0_i32, %c0_i32_0, %c0_i32_1 : i32, i32, i32
  }
  func.func @transform_2(%arg0: i32) -> (i32, i32) {
    %c0_i32 = arith.constant 0 : i32
    %c0_i32_0 = arith.constant 0 : i32
    %c0_i32_1 = arith.constant 0 : i32
    return %c0_i32, %c0_i32_0 : i32, i32
  }
  func.func @transform_3(%arg0: i32) -> (i32, i32) {
    %c0_i32 = arith.constant 0 : i32
    %c0_i32_0 = arith.constant 0 : i32
    return %arg0, %c0_i32 : i32, i32
  }
}

</mosaic_0001>

<bundles_post_ra>
// kernel: tpu_custom_call.1
= control target key start
LH: loop header
LB: loop body
LE: loop exit
PB: predicated region body
PF: predicated region fallthrough
CT: control target
= control target key end

     0   :  { %8 = vsyncpa [#allocation3], 0  ;;  %s261_s0 = inlined_call_operand.hbm [shape: f32[2,16,32], index: 0, kind: input, shape index: {}]   ;;  %s262_s1 = inlined_call_operand.hbm [shape: f32[1,16,32], index: 1, kind: input, shape index: {}]   ;;  %s263_s2 = inlined_call_operand.vmem [shape: f32[1,16], index: 2, kind: input, shape index: {}]   ;;  %s264_s3 = inlined_call_operand.hbm [shape: f32[2,16], index: 3, kind: output, shape index: {}]  }
   0x1   :  { %9 = vsyncpa [#allocation6], 0 }
   0x2   :  { %10 = vsyncpa [#allocation4], 0  ;;  %s223_s12 = smov [#allocation2]  }
   0x3   :  { %s16_s13 = sshll.u32 %s223_s12, 4  ;;  %s17_s13 = int_to_ptr.vmem [resolvable:$true] %s16_s13 }
   0x4   :  { %s165_s14 = scalar_lea.vmem %s17_s13, 512  ;;  %p170_p1 = scmp.lt.s32.totalorder %s17_s13, %s17_s13 }
   0x5   :  { %p166_p0 = scmp.ne.s32.totalorder %s17_s13, %s165_s14  ;;  %p171_p2 = scmp.lt.s32.totalorder %s165_s14, %s165_s14 }
   0x7   :  { %p172_p3 = por %p171_p2, %p170_p1 }
   0x9   :  { %p173_p4 = pnand %p172_p3, %p166_p0 }
   0xb   :  { %176 = shalt.err (!%p173_p4)
}
   0xc   :  { %s224_s15 = smov 128   ;;  %s225_s16 = smov 8  }
   0xd   :  { %22 = dma.hbm_to_vmem [thread:$0]  %s261_s0, 512, %s17_s13, [#allocation3], %s224_s15, %s224_s15, %s225_s16  }
   0xe   :  { %s226_s19 = smov [#allocation5]  }
   0xf   :  { %s28_s20 = sshll.u32 %s226_s19, 4  ;;  %s29_s20 = int_to_ptr.vmem [resolvable:$true] %s28_s20 }
  0x10   :  { %s185_s21 = scalar_lea.vmem %s29_s20, 256  ;;  %p190_p6 = scmp.lt.s32.totalorder %s29_s20, %s29_s20 }
  0x11   :  { %p186_p5 = scmp.ne.s32.totalorder %s29_s20, %s185_s21  ;;  %p191_p7 = scmp.lt.s32.totalorder %s185_s21, %s185_s21 }
  0x13   :  { %p192_p8 = por %p191_p7, %p190_p6 }
  0x15   :  { %p193_p9 = pnand %p192_p8, %p186_p5 }
  0x17   :  { %196 = shalt.err (!%p193_p9)
}
  0x18   :  { %34 = dma.hbm_to_vmem [thread:$0]  %s262_s1, 256, %s29_s20, [#allocation6], %s224_s15, %s224_s15, %s225_s16  }
  0x19   :  { %217 = dma.done.wait [#allocation3], 512  }
  0x1a   :  { %218 = vsyncadd [#allocation3], 4294966784 }
  0x1b   :  { %219 = dma.done.wait [#allocation6], 256  }
  0x1c   :  { %220 = vsyncadd [#allocation6], 4294967040  ;;  %v45_v0 = vld [vmem:[#allocation2 + $0x10] sm:$0xff]  ;;  %v47_v1 = vld [vmem:[#allocation5] sm:$0xff]  ;;  %vm53_vm0 = vcmask 261120   ;;  %v227_v15 = vmov 0   ;;  %v105_v26 = vlaneseq }
  0x1d   :  { %v43_v2 = vld [vmem:[#allocation2] sm:$0xff]  ;;  %v51_v3 = vmul.f32 %v47_v1, %v45_v0  ;;  %v46_v5 = vld [vmem:[#allocation2 + $0x18] sm:$0xff]  ;;  %v48_v6 = vld [vmem:[#allocation5 + $0x8] sm:$0xff]  ;;  %156 = vset.pattern.permute.xlu0 %v227_v15  ;;  %155 = vset.pattern.permute.xlu1 %v227_v15  ;;  %vm116_vm1 = vcmask 130112   ;;  %vm127_vm2 = vcmask 1041409   ;;  %vm130_vm3 = vcmask 123904  }
  0x1e   :  { %v49_v4 = vmul.f32 %v47_v1, %v43_v2  ;;  %v44_v7 = vld [vmem:[#allocation2 + $0x8] sm:$0xff]  ;;  %v52_v8 = vmul.f32 %v48_v6, %v46_v5  ;;  %v148_v14 = vld [vmem:[%s263_s2] ss:$0 sm:$0xff]  ;;  %v106_v27 = vand.u32 127, %v105_v26  ;;  %v108_v30 = vshrl.u32 %v105_v26, 7  ;;  %s228_s2 = smov [#allocation7]  }
  0x1f   :  { %v50_v9 = vmul.f32 %v48_v6, %v44_v7  ;;  %v60_v10 = vsel %vm53_vm0, %v51_v3, 0.0  ;;  %s138_s24 = sshll.u32 %s228_s2, 4  ;;  %s139_s24 = int_to_ptr.vmem [resolvable:$true] %s138_s24 }
  0x20   :  { %v54_v11 = vsel %vm53_vm0, %v49_v4, 0.0  ;;  %61 = vadd.xlane.f32.xlu1 %v60_v10  ;;  %v63_v12 = vsel %vm53_vm0, %v52_v8, 0.0  ;;  %v111_v28 = vadd.s32 4294967288, %v106_v27  ;;  %v109_v33 = vsub.s32 %v106_v27, %v108_v30  ;;  %s197_s25 = scalar_lea.vmem %s139_s24, 32  ;;  %p202_p11 = scmp.lt.s32.totalorder %s139_s24, %s139_s24 }
  0x21   :  { %55 = vadd.xlane.f32.xlu0 %v54_v11  ;;  %v57_v13 = vsel %vm53_vm0, %v50_v9, 0.0  ;;  %p198_p10 = scmp.ne.s32.totalorder %s139_s24, %s197_s25  ;;  %p203_p12 = scmp.lt.s32.totalorder %s197_s25, %s197_s25 }
  0x22   :  { %v114_v31 = vsub.s32 %v111_v28, %v108_v30 }
  0x23   :  { %p204_p13 = por %p203_p12, %p202_p11 }
  0x24   :  { %64 = vadd.xlane.f32.xlu1 %v63_v12 }
  0x25   :  { %58 = vadd.xlane.f32.xlu0 %v57_v13  ;;  %p205_p0 = pnand %p204_p13, %p198_p10 }
  0x35   :  { %81 = vbcast.lane.b32.xlu1 %v148_v14, 264 }
  0x3b   :  { %77 = vbcast.lane.b32.xlu0 %v148_v14, 256 }
  0xa9   :  { %v62_v16 = vpop.xlane.xlu1 %61 }
  0xaa   :  { %v56_v17 = vpop.xlane.xlu0 %55 }
  0xad   :  { %v65_v18 = vpop.xlane.xlu1 %64 }
  0xae   :  { %v59_v19 = vpop.xlane.xlu0 %58 }
  0xb1   :  { %v82_v23 = vpop.permute.xlu1 %81 }
  0xb2   :  { %v78_v20 = vpop.permute.xlu0 %77  ;;  %v86_v24 = vadd.f32 %v82_v23, %v59_v19  ;;  %v88_v25 = vadd.f32 %v82_v23, %v65_v18 }
  0xb3   :  { %v85_v21 = vadd.f32 %v78_v20, %v56_v17  ;;  %v87_v22 = vadd.f32 %v78_v20, %v62_v16 }
  0xb5   :  { %100 = vperm.xlu0 %156, %v87_v22   ;;  %94 = vperm.xlu1 %155, %v85_v21  }
  0xb9   :  { %97 = vperm.xlu1 %155, %v86_v24  }
  0xbd   :  { %103 = vperm.xlu1 %155, %v88_v25  }
 0x130   :  { %v95_v29 = vpop.permute.xlu1 %94  ;;  %v101_v34 = vpop.permute.xlu0 %100 }
 0x131   :  { %v121_v37 = vrot.slane %v101_v34, %v109_v33  ;;  %v110_v38 = vrot.slane %v95_v29, %v109_v33 }
 0x134   :  { %v98_v32 = vpop.permute.xlu1 %97 }
 0x135   :  { %v115_v35 = vrot.slane %v98_v32, %v114_v31 }
 0x137   :  { %v117_v40 = vsel %vm116_vm1, %v115_v35, %v110_v38 }
 0x138   :  { %v104_v36 = vpop.permute.xlu1 %103 }
 0x139   :  { %v125_v39 = vrot.slane %v104_v36, %v114_v31 }
 0x13b   :  { %v126_v41 = vsel %vm116_vm1, %v125_v39, %v121_v37 }
 0x13c   :  { %v128_v42 = vsel %vm127_vm2, %v126_v41, %v117_v40 }
 0x13d   :  { %131 = vst.msk [vmem:[#allocation7] sm:$0x3] %vm130_vm3, %v128_v42 }
 0x13e   :  { %208 = shalt.err (!%p205_p0)
}
 0x13f   :  { %141 = dma.vmem_to_hbm [thread:$0]  %s139_s24, 32, %s264_s3, [#allocation4]  }
 0x140   :  { %221 = dma.done.wait [#allocation4], 32  }
 0x141   :  { %222 = vsyncadd [#allocation4], 4294967264 }
 0x142   :  { %145 = vsyncpa [#allocation3], 1 }
 0x143   :  { %146 = vsyncpa [#allocation6], 1 }
 0x144   :  { %147 = vsyncpa [#allocation4], 1 }

</bundles_post_ra>
